<compile_context>
chip_gen: v6e
topology: v6e:2x2x1
jax: 0.10.0
libtpu: 0.0.40
codegen_flags: <defaults>
</compile_context>

<pallas_src>
import functools

import jax
import jax.numpy as jnp
from jax import lax
from jax.experimental import pallas as pl
from jax.experimental.pallas import tpu as pltpu

_LANE = 128
_SUBLANE = 8
# Budget for the double-buffered f32 x tile (keeps us well inside v7x's 64 MiB VMEM
# without needing an explicit vmem_limit_bytes at realistic hidden_dim).
_X_VMEM_BUDGET = 24 << 20


def _round_up(x, m):
    return (x + m - 1) // m * m


def _choose_tm(batch, hidden_dim, tm_max):
    """Batch tile size. 128-aligned, VMEM-budgeted, >=2 grid steps for large batches."""
    if batch <= _LANE:
        # Single block equal to the full array: no padding, no ragged tiles.
        return batch
    budget_rows = max(_LANE, (_X_VMEM_BUDGET // (2 * 4 * max(hidden_dim, 1))) // _LANE * _LANE)
    tm_cap = max(_LANE, min(_round_up(tm_max, _LANE), budget_rows))
    # At least 2 grid steps so the "parallel" batch axis shards across both v7x cores.
    n_steps = max(pl.cdiv(batch, tm_cap), 2)
    return _round_up(pl.cdiv(batch, n_steps), _LANE)


def _classifier_kernel(x_ref, w1_ref, b1_ref, w2t_ref, b2t_ref, o_ref):
    # x_ref: (TM, hidden_dim) f32 streamed tile; weights/biases are VMEM-resident
    # across grid steps (constant index_map). Cast x to bf16 in-kernel so the
    # wrapper never does a standalone HBM astype pass.
    x = x_ref[...].astype(w1_ref.dtype)
    h = jnp.dot(x, w1_ref[...], preferred_element_type=jnp.float32)   # (TM, 128) f32
    h = jnp.tanh(h + b1_ref[...])                                     # f32 bias + f32 tanh (v5e-safe)
    # Second matmul computed transposed (contract the hidden axis of both operands):
    # (n_out, 128) x (TM, 128) -> (n_out, TM). Batch lands on the lane axis, so the
    # store is lane-dense with no wasted padded output lanes.
    yt = lax.dot_general(
        w2t_ref[...], h.astype(w2t_ref.dtype),
        dimension_numbers=(((1,), (1,)), ((), ())),
        preferred_element_type=jnp.float32)                           # (n_out, TM) f32
    o_ref[...] = (yt + b2t_ref[...]).astype(o_ref.dtype)


@functools.partial(jax.jit, static_argnames=("tm_max",))
def sentiment_classifier(representation, w1, b1, w2, b2, *, tm_max=2048):
    """Pallas forward.

    representation: (B, hidden_dim) float32
    w1: (hidden_dim, hidden_size)   (transpose of PyTorch's (out, in))
    b1: (1, hidden_size) or (hidden_size,)
    w2: (hidden_size, num_polarities)
    b2: (1, num_polarities) or (num_polarities,)
    """
    B, hidden_dim = representation.shape
    hidden_size, num_polarities = w2.shape

    # --- pad the (tiny) parameters once; x itself is never padded or copied ---
    hid_p = _round_up(max(hidden_size, _LANE), _LANE)     # full-lane hidden tile
    n_out = _round_up(num_polarities, _SUBLANE)           # one f32 sublane tile of outputs

    w1_p = jnp.zeros((hidden_dim, hid_p), jnp.bfloat16).at[:, :hidden_size].set(
        w1.astype(jnp.bfloat16))
    b1_p = jnp.zeros((1, hid_p), jnp.float32).at[0, :hidden_size].set(
        b1.astype(jnp.float32).reshape(hidden_size))
    # Second layer stored transposed: (n_out, hid_p); padded rows/cols are zero.
    w2t_p = jnp.zeros((n_out, hid_p), jnp.bfloat16).at[:num_polarities, :hidden_size].set(
        w2.astype(jnp.bfloat16).T)
    b2t_p = jnp.zeros((n_out, 1), jnp.float32).at[:num_polarities, 0].set(
        b2.astype(jnp.float32).reshape(num_polarities))

    # --- batch tiling: ragged last block (pl.cdiv grid) instead of padding x ---
    tm = _choose_tm(B, hidden_dim, tm_max)
    grid_n = pl.cdiv(B, tm)
    b_out = grid_n * tm   # output allocated slightly padded; tail cols sliced below

    out_t = pl.pallas_call(
        _classifier_kernel,
        out_shape=jax.ShapeDtypeStruct((n_out, b_out), jnp.float32),
        grid_spec=pltpu.PrefetchScalarGridSpec(
            num_scalar_prefetch=0,
            grid=(grid_n,),
            in_specs=[
                # Streamed operand: one f32 row-tile per grid step (auto double-buffered).
                pl.BlockSpec((tm, hidden_dim), lambda i: (i, 0)),
                # Weights / biases: constant block index -> fetched once, VMEM-resident.
                pl.BlockSpec(w1_p.shape, lambda i: (0, 0)),
                pl.BlockSpec(b1_p.shape, lambda i: (0, 0)),
                pl.BlockSpec(w2t_p.shape, lambda i: (0, 0)),
                pl.BlockSpec(b2t_p.shape, lambda i: (0, 0)),
            ],
            # Transposed output: batch on the lane axis, tm is 128-aligned when grid_n > 1.
            out_specs=pl.BlockSpec((n_out, tm), lambda i: (0, i)),
        ),
        compiler_params=pltpu.CompilerParams(
            dimension_semantics=("parallel",),  # megacore sharding on v7x
        ),
    )(representation, w1_p, b1_p, w2t_p, b2t_p)

    # Tiny (num_polarities, B) slice + transpose back to the PyTorch layout.
    return out_t[:num_polarities, :B].T


def init_params(key, hidden_dim, hidden_size, num_polarities):
    """Matches nn.init.uniform_(-0.1, 0.1) for weights, zeros for biases."""
    k1, k2 = jax.random.split(key)
    # PyTorch Linear weight is (out, in); we store the transpose (in, out).
    w1 = jax.random.uniform(k1, (hidden_dim, hidden_size), jnp.float32,
                            minval=-0.1, maxval=0.1)
    b1 = jnp.zeros((1, hidden_size), jnp.float32)
    w2 = jax.random.uniform(k2, (hidden_size, num_polarities), jnp.float32,
                            minval=-0.1, maxval=0.1)
    b2 = jnp.zeros((1, num_polarities), jnp.float32)
    return w1, b1, w2, b2


if __name__ == "__main__":
    # Shapes implied by the forward: (batch, hidden_dim) -> (batch, num_polarities)
    hidden_dim = 32     # input representation size (e.g. CLS token dim)
    hidden_size = 32    # classifier hidden layer
    num_polarities = 3  # sentiment classes

    key = jax.random.PRNGKey(0)
    k_x, k_x2, k_p = jax.random.split(key, 3)
    w1, b1, w2, b2 = init_params(k_p, hidden_dim, hidden_size, num_polarities)

    def ref_bf16(x):
        # Mirrors the kernel numerics: bf16 MXU inputs, f32 accumulate, f32 tanh.
        x_bf, w1_bf, w2_bf = (a.astype(jnp.bfloat16) for a in (x, w1, w2))
        h = jnp.tanh(jnp.dot(x_bf, w1_bf, preferred_element_type=jnp.float32) + b1)
        return jnp.dot(h.astype(jnp.bfloat16), w2_bf,
                       preferred_element_type=jnp.float32) + b2

    def ref_f32(x):
        # Pure-f32 PyTorch-equivalent forward (loose sanity check on semantics).
        return jnp.tanh(x @ w1 + b1) @ w2 + b2

    # Small demo batch: single full-array tile, grid=(1,).
    x = jax.random.normal(k_x, (2, hidden_dim), jnp.float32)
    out = jax.block_until_ready(sentiment_classifier(x, w1, b1, w2, b2))
    assert out.shape == (2, num_polarities)
    assert jnp.allclose(out, ref_bf16(x), atol=2e-3, rtol=2e-3)
    assert jnp.allclose(out, ref_f32(x), atol=5e-2, rtol=5e-2)

    # Larger batch: exercises the multi-step grid (2 tiles, ragged last x block).
    x2 = jax.random.normal(k_x2, (300, hidden_dim), jnp.float32)
    out2 = jax.block_until_ready(sentiment_classifier(x2, w1, b1, w2, b2))
    assert out2.shape == (300, num_polarities)
    assert jnp.allclose(out2, ref_bf16(x2), atol=2e-3, rtol=2e-3)
    assert jnp.allclose(out2, ref_f32(x2), atol=5e-2, rtol=5e-2)

    print("KERNEL_OK")
</pallas_src>

<mosaic_0001>
module attributes {stable_mosaic.version = 11 : i64} {
  func.func @_classifier_kernel(%arg0: i32, %arg1: memref<2x32xf32, #tpu.memory_space<vmem>>, %arg2: memref<32x128xbf16, #tpu.memory_space<vmem>>, %arg3: memref<1x128xf32, #tpu.memory_space<vmem>>, %arg4: memref<8x128xbf16, #tpu.memory_space<vmem>>, %arg5: memref<8x1xf32, #tpu.memory_space<vmem>>, %arg6: memref<8x2xf32, #tpu.memory_space<vmem>>) attributes {dimension_semantics = [#tpu.dimension_semantics<parallel>], iteration_bounds = array<i64: 1>, scalar_prefetch = 0 : i64, scratch_operands = 0 : i64, tpu.core_type = #tpu.core_type<tc>, window_params = [{transform_indices = @transform_0, window_bounds = array<i64: 2, 32>}, {pipeline_mode = #tpu.pipeline_mode<synchronous>, transform_indices = @transform_1, window_bounds = array<i64: 32, 128>}, {pipeline_mode = #tpu.pipeline_mode<synchronous>, transform_indices = @transform_2, window_bounds = array<i64: 1, 128>}, {pipeline_mode = #tpu.pipeline_mode<synchronous>, transform_indices = @transform_3, window_bounds = array<i64: 8, 128>}, {pipeline_mode = #tpu.pipeline_mode<synchronous>, transform_indices = @transform_4, window_bounds = array<i64: 8, 1>}, {transform_indices = @transform_5, window_bounds = array<i64: 8, 2>}]} {
    %c0 = arith.constant 0 : index
    %c0_0 = arith.constant 0 : index
    %0 = vector.load %arg1[%c0, %c0_0] : memref<2x32xf32, #tpu.memory_space<vmem>>, vector<2x32xf32>
    %1 = arith.truncf %0 : vector<2x32xf32> to vector<2x32xbf16>
    %c0_1 = arith.constant 0 : index
    %c0_2 = arith.constant 0 : index
    %2 = vector.load %arg2[%c0_1, %c0_2] : memref<32x128xbf16, #tpu.memory_space<vmem>>, vector<32x128xbf16>
    %cst = arith.constant dense<0.000000e+00> : vector<2x128xf32>
    %3 = tpu.matmul %1, %2, %cst {dimension_numbers = #tpu.dot_dimension_numbers<[1], [0], [0], [1], [0, 0, 1, 1], [], []>} : vector<2x32xbf16>, vector<32x128xbf16>, vector<2x128xf32> -> vector<2x128xf32>
    %c0_3 = arith.constant 0 : index
    %c0_4 = arith.constant 0 : index
    %4 = vector.load %arg3[%c0_3, %c0_4] : memref<1x128xf32, #tpu.memory_space<vmem>>, vector<1x128xf32>
    %5 = vector.broadcast %4 : vector<1x128xf32> to vector<2x128xf32>
    %6 = arith.addf %3, %5 : vector<2x128xf32>
    %7 = math.tanh %6 : vector<2x128xf32>
    %c0_5 = arith.constant 0 : index
    %c0_6 = arith.constant 0 : index
    %8 = vector.load %arg4[%c0_5, %c0_6] : memref<8x128xbf16, #tpu.memory_space<vmem>>, vector<8x128xbf16>
    %9 = arith.truncf %7 : vector<2x128xf32> to vector<2x128xbf16>
    %cst_7 = arith.constant dense<0.000000e+00> : vector<8x2xf32>
    %10 = tpu.matmul %8, %9, %cst_7 {dimension_numbers = #tpu.dot_dimension_numbers<[1], [1], [0], [0], [0, 0, 1, 0], [], []>} : vector<8x128xbf16>, vector<2x128xbf16>, vector<8x2xf32> -> vector<8x2xf32>
    %c0_8 = arith.constant 0 : index
    %c0_9 = arith.constant 0 : index
    %11 = vector.load %arg5[%c0_8, %c0_9] : memref<8x1xf32, #tpu.memory_space<vmem>>, vector<8x1xf32>
    %12 = vector.broadcast %11 : vector<8x1xf32> to vector<8x2xf32>
    %13 = arith.addf %10, %12 : vector<8x2xf32>
    %c0_10 = arith.constant 0 : index
    %c0_11 = arith.constant 0 : index
    %14 = vector.load %arg6[%c0_10, %c0_11] : memref<8x2xf32, #tpu.memory_space<vmem>>, vector<8x2xf32>
    tpu.vector_store %arg6[%c0_10, %c0_11], %13 {strides = array<i32>} : memref<8x2xf32, #tpu.memory_space<vmem>>, vector<8x2xf32>,
    return
  }
  func.func @transform_0(%arg0: i32) -> (i32, i32) {
    %c0_i32 = arith.constant 0 : i32
    %c0_i32_0 = arith.constant 0 : i32
    return %arg0, %c0_i32 : i32, i32
  }
  func.func @transform_1(%arg0: i32) -> (i32, i32) {
    %c0_i32 = arith.constant 0 : i32
    %c0_i32_0 = arith.constant 0 : i32
    %c0_i32_1 = arith.constant 0 : i32
    return %c0_i32, %c0_i32_0 : i32, i32
  }
  func.func @transform_2(%arg0: i32) -> (i32, i32) {
    %c0_i32 = arith.constant 0 : i32
    %c0_i32_0 = arith.constant 0 : i32
    %c0_i32_1 = arith.constant 0 : i32
    return %c0_i32, %c0_i32_0 : i32, i32
  }
  func.func @transform_3(%arg0: i32) -> (i32, i32) {
    %c0_i32 = arith.constant 0 : i32
    %c0_i32_0 = arith.constant 0 : i32
    %c0_i32_1 = arith.constant 0 : i32
    return %c0_i32, %c0_i32_0 : i32, i32
  }
  func.func @transform_4(%arg0: i32) -> (i32, i32) {
    %c0_i32 = arith.constant 0 : i32
    %c0_i32_0 = arith.constant 0 : i32
    %c0_i32_1 = arith.constant 0 : i32
    return %c0_i32, %c0_i32_0 : i32, i32
  }
  func.func @transform_5(%arg0: i32) -> (i32, i32) {
    %c0_i32 = arith.constant 0 : i32
    %c0_i32_0 = arith.constant 0 : i32
    return %c0_i32, %arg0 : i32, i32
  }
}

</mosaic_0001>

<bundles_post_ra>
// kernel: sentiment_classifier.1
= control target key start
LH: loop header
LB: loop body
LE: loop exit
PB: predicated region body
PF: predicated region fallthrough
CT: control target
= control target key end

     0   :  { %v176_v0 = vmov 0.0   ;;  %vm177_vm0 = vmmov 0   ;;  %vm46_vm1 = vcmask 261120   ;;  %v178_v5 = vmov 0   ;;  %s230_s1 = inlined_call_operand.vmem [shape: bf16[32,128], index: 1, kind: input, shape index: {}]   ;;  %s231_s0 = inlined_call_operand.vmem [shape: f32[2,32], index: 0, kind: input, shape index: {}]   ;;  %s232_s4 = inlined_call_operand.vmem [shape: f32[8,1], index: 4, kind: input, shape index: {}]   ;;  %s233_s2 = inlined_call_operand.vmem [shape: f32[1,128], index: 2, kind: input, shape index: {}]   ;;  %s234_s3 = inlined_call_operand.vmem [shape: bf16[8,128], index: 3, kind: input, shape index: {}]   ;;  %s235_s5 = inlined_call_operand.vmem [shape: f32[8,2], index: 5, kind: output, shape index: {}]  }
   0x1   :  { %154 = vmatprep.subr.bf16.mxu0 %v176_v0  ;;  %v172_v1 = vld [vmem:[%s230_s1 + $0x8] sm:$0xff]   ;;  %158 = vmatprep.mubr.msk.bf16.mxu0 %vm177_vm0, %v176_v0  ;;  %v173_v2 = vld [vmem:[%s230_s1] sm:$0xff]   ;;  %vm139_vm2 = vcmask 15360  }
   0x2   :  { %162 = vmatprep.subr.bf16.mxu1 %v176_v0  ;;  %164 = vmatprep.mubr.msk.bf16.mxu1 %vm177_vm0, %v176_v0  ;;  %v21_v3 = vld [vmem:[%s231_s0] sm:$0x3] }
   0x3   :  { %155 = vmatpush3.bf16.msra.mxu0 %v172_v1  ;;  %v22_v4 = vpack.c.bf16 %v21_v3, %v21_v3  ;;  %171 = vset.pattern.permute.xlu0 %v178_v5  ;;  %v93_v6 = vld [vmem:[%s232_s4] sm:$0xff] }
   0x4   :  { %156 = vmatprep.subr.bf16.mxu0 %v176_v0  ;;  %96 = vperm.xlu0 %171, %v93_v6   ;;  %v145_v7 = vld [vmem:[%s233_s2] ss:$0 sm:$0xff] }
   0x5   :  { %v91_v15 = vld [vmem:[%s234_s3] sm:$0xf] }
   0x7   :  { %157 = vmatpush3.bf16.msra.mxu0 %v173_v2 }
   0xa   :  { %159 = vmatmul.mubr.msk.bf16.vlgmr.msra.gmra.mxu0 %vm46_vm1, %v22_v4 }
  0x7f   :  { %v97_v16 = vpop.permute.xlu0 %96 }
  0xca   :  { %v84_v8 = vpop.f32.mrf.mxu0 }
  0xcb   :  { %v85_v9 = vadd.f32 %v145_v7, %v84_v8 }
  0xcc   :  { %v160_v10 = vpop.f32.mrf.mxu0 }
  0xcd   :  { %174 = vtanh.f32 %v85_v9 }
  0xce   :  { %v87_v11 = vpop.f32.mrf.mxu0 }
  0xd0   :  { %v161_v12 = vpop.f32.mrf.mxu0 }
  0xda   :  { %v175_v13 = vpop.eup %174 }
  0xdb   :  { %v92_v14 = vpack.c.bf16 %v175_v13, %v175_v13 }
  0xdd   :  { %163 = vmatpush3.bf16.xpose.msra.mxu1 %v92_v14 }
  0xe4   :  { %165 = vmatmul.mubr.bf16.vlgmr.msra.gmra.mxu1 %v91_v15 }
 0x1a4   :  { %v133_v17 = vpop.f32.mrf.mxu1 }
 0x1a5   :  { %v134_v18 = vadd.f32 %v133_v17, %v97_v16 }
 0x1a6   :  { %v166_v19 = vpop.f32.mrf.mxu1 }
 0x1a7   :  { %140 = vst.msk [vmem:[%s235_s5] sm:$0xff] %vm139_vm2, %v134_v18 }
 0x1a8   :  { %v136_v20 = vpop.f32.mrf.mxu1 }
 0x1aa   :  { %v167_v21 = vpop.f32.mrf.mxu1 }

</bundles_post_ra>
